<compile_context>
chip_gen: v7x
topology: tpu7x:2x2x1
jax: 0.10.0
libtpu: 0.0.40
codegen_flags: <defaults>
</compile_context>

<pallas_src>
import math

import jax
import jax.numpy as jnp
from jax import lax
from jax.experimental import pallas as pl
from jax.experimental.pallas import tpu as pltpu


def _sae_kernel(x_ref, w_ref, b_ref, recon_ref, enc_ref):
    # x_ref:     [TN, E]   input-row tile (bf16, resident across the h axis)
    # w_ref:     [TH, E]   tied dictionary weight tile (bf16)
    # b_ref:     [1,  TH]  encoder-bias tile (f32)
    # recon_ref: [TN, E]   f32 reconstruction tile; VMEM-resident across h and used
    #                      directly as the accumulator (no extra scratch buffer)
    # enc_ref:   [TN, TH]  encoded (post-ReLU) output tile
    h = pl.program_id(1)

    @pl.when(h == 0)
    def _():
        recon_ref[...] = jnp.zeros_like(recon_ref)

    x = x_ref[...]
    w = w_ref[...]

    # Encoder: contract E (dim 1 of x with dim 1 of W) -> [TN, TH].
    # bf16 x bf16 -> f32 accumulation on the MXU; no transposed W tile in VMEM.
    pre = lax.dot_general(
        x, w,
        dimension_numbers=(((1,), (1,)), ((), ())),
        preferred_element_type=jnp.float32,
    )
    enc = jnp.maximum(pre + b_ref[...], 0.0)
    enc_ref[...] = enc.astype(enc_ref.dtype)

    # Decoder (tied weights, no bias): enc [TN, TH] @ W [TH, E], accumulated over h
    # directly into the resident f32 output block.  enc is deliberately re-quantized
    # to the weight's bf16 dtype so the decoder also runs the single-pass MXU path.
    recon_ref[...] += jnp.dot(
        enc.astype(w.dtype), w, preferred_element_type=jnp.float32
    )


def _round_up(x, m):
    return ((x + m - 1) // m) * m


def _vmem_est(tn, th, e_pad, in_bytes, enc_bytes):
    """Rough double-buffered VMEM footprint (bytes)."""
    x_t = tn * e_pad * in_bytes
    w_t = th * e_pad * in_bytes
    b_t = 8 * th * 4                  # (1, TH) pads to 8 sublanes of f32
    enc_t = tn * th * enc_bytes
    rec_t = tn * e_pad * 4            # f32 output block doubles as the accumulator
    return 2 * (x_t + w_t + b_t + enc_t + rec_t)


def _vmem_capacity_bytes():
    try:
        return int(pltpu.get_tpu_info().vmem_capacity_bytes)
    except Exception:
        return 64 * 1024 * 1024       # conservative fallback (v7x-sized)


def sae_forward(x, weight, bias, *, tn=512, th=512, use_bf16=True, enc_dtype=None):
    """Pallas SAE forward.

    Args:
      x:      [B, S, E] or [N, E] float32
      weight: [H, E] float32   (tied encoder/decoder weight)
      bias:   [H]    float32   (encoder bias)
      use_bf16:  stream x / W (and the decoder's enc operand) in bf16 with f32
                 accumulation.  Set False for strict f32 parity (slower).
      enc_dtype: dtype for the `encoded` output (default: x.dtype).
    Returns:
      (reconstructed, encoded) with the same leading dims as x.
    """
    was_3d = x.ndim == 3
    if was_3d:
        B, S, E = x.shape
        x2d = x.reshape(-1, E)
    else:
        x2d = x
    N, E = x2d.shape
    H = weight.shape[0]

    compute_dtype = jnp.bfloat16 if use_bf16 else x2d.dtype
    in_bytes = jnp.dtype(compute_dtype).itemsize
    enc_out_dtype = jnp.dtype(enc_dtype) if enc_dtype is not None else x2d.dtype
    enc_bytes = enc_out_dtype.itemsize

    # Pad to lane/sublane friendly sizes; pick tiles no bigger than the (padded) dims.
    E_pad = _round_up(E, 128)
    n_rows = _round_up(N, 8)
    tn_eff = min(tn, n_rows)                   # multiple of 8
    th_eff = min(th, _round_up(H, 128))        # multiple of 128

    # Per-generation VMEM budget (v5e/v6e: 128 MiB -> ~92 MiB; v7x: 64 MiB -> ~37 MiB).
    cap = _vmem_capacity_bytes()
    budget = int(cap * (0.72 if cap >= 100 * 1024 * 1024 else 0.58))

    # Shrink TH first (does not affect W re-stream count), then TN, until it fits.
    while _vmem_est(tn_eff, th_eff, E_pad, in_bytes, enc_bytes) > budget and th_eff > 128:
        th_eff = max(128, (th_eff // 2) // 128 * 128)
    while _vmem_est(tn_eff, th_eff, E_pad, in_bytes, enc_bytes) > budget and tn_eff > 8:
        tn_eff = max(8, (tn_eff // 2) // 8 * 8)

    # Grow TN preferentially with leftover budget (W HBM traffic scales as N/TN).
    tn_cap = min(1024, n_rows)
    while True:
        cand = min(_round_up(tn_eff * 2, 8), tn_cap)
        if cand <= tn_eff or _vmem_est(cand, th_eff, E_pad, in_bytes, enc_bytes) > budget:
            break
        tn_eff = cand

    # Keep >= 2 row tiles when rows are plentiful so the v7x megacore can shard axis 0.
    if tn_eff >= n_rows and n_rows >= 512:
        tn_eff = _round_up((n_rows + 1) // 2, 8)

    N_pad = _round_up(N, tn_eff)
    H_pad = _round_up(H, th_eff)

    # Zero-pad operands (padded hidden units have zero weight & bias -> zero enc;
    # padded embed columns contribute nothing to either matmul), then cast streams.
    x_p = x2d
    if (N_pad, E_pad) != (N, E):
        x_p = jnp.pad(x2d, ((0, N_pad - N), (0, E_pad - E)))
    w_p = weight
    if (H_pad, E_pad) != (H, E):
        w_p = jnp.pad(weight, ((0, H_pad - H), (0, E_pad - E)))
    x_p = x_p.astype(compute_dtype)
    w_p = w_p.astype(compute_dtype)
    b_p = jnp.pad(bias.astype(jnp.float32), (0, H_pad - H)).reshape(1, H_pad)

    grid = (N_pad // tn_eff, H_pad // th_eff)

    est = _vmem_est(tn_eff, th_eff, E_pad, in_bytes, enc_bytes)
    vmem_limit = int(min(cap, max(est * 1.4, 48 * 1024 * 1024)))

    bytes_accessed = int(
        N_pad * E_pad * in_bytes                       # x
        + H_pad * E_pad * in_bytes * grid[0]           # W streamed once per row tile
        + H_pad * 4                                    # bias
        + N_pad * H_pad * enc_bytes                    # enc out
        + N_pad * E_pad * 4                            # recon out
    )

    recon_p, enc_p = pl.pallas_call(
        _sae_kernel,
        out_shape=(
            jax.ShapeDtypeStruct((N_pad, E_pad), jnp.float32),
            jax.ShapeDtypeStruct((N_pad, H_pad), enc_out_dtype),
        ),
        grid_spec=pltpu.PrefetchScalarGridSpec(
            num_scalar_prefetch=0,
            grid=grid,
            in_specs=[
                pl.BlockSpec((tn_eff, E_pad), lambda n, h: (n, 0)),   # x (resident over h)
                pl.BlockSpec((th_eff, E_pad), lambda n, h: (h, 0)),   # W tile
                pl.BlockSpec((1, th_eff), lambda n, h: (0, h)),       # bias tile
            ],
            out_specs=[
                pl.BlockSpec((tn_eff, E_pad), lambda n, h: (n, 0)),   # recon (acc over h)
                pl.BlockSpec((tn_eff, th_eff), lambda n, h: (n, h)),  # enc
            ],
        ),
        compiler_params=pltpu.CompilerParams(
            dimension_semantics=("parallel", "arbitrary"),
            vmem_limit_bytes=vmem_limit,
        ),
        cost_estimate=pl.CostEstimate(
            flops=int(4 * N_pad * E_pad * H_pad),
            transcendentals=0,
            bytes_accessed=bytes_accessed,
        ),
    )(x_p, w_p, b_p)

    recon = recon_p[:N, :E].astype(x2d.dtype)
    enc = enc_p[:N, :H]
    if was_3d:
        recon = recon.reshape(B, S, E)
        enc = enc.reshape(B, S, H)
    return recon, enc


def init_sae_params(key, input_size, hidden_size):
    """Deterministic init matching TiedLinear.reset_parameters:
    kaiming_uniform_(a=sqrt(5)) -> U(-1/sqrt(fan_in), 1/sqrt(fan_in)) on weight,
    bias -> U(-1/sqrt(fan_in), 1/sqrt(fan_in)), fan_in = input_size."""
    kw, kb = jax.random.split(key)
    bound = 1.0 / math.sqrt(input_size)
    weight = jax.random.uniform(
        kw, (hidden_size, input_size), jnp.float32, -bound, bound
    )
    bias = jax.random.uniform(kb, (hidden_size,), jnp.float32, -bound, bound)
    return weight, bias


# TODO(synk): SAELoss / compute_loss / train_step (sparsity penalty + Adam) are training
# utilities, not part of the forward pass, and are not implemented here.
# TODO(synk): for very large E (>= 8K) a third K-split grid axis would keep TN large
# instead of letting the shrink loop collapse it; not needed at these sizes.

if __name__ == "__main__":
    key = jax.random.PRNGKey(0)
    k_x, k_p = jax.random.split(key)

    batch, seq, embed_dim, hidden = 2, 8, 32, 64
    x = jax.random.normal(k_x, (batch, seq, embed_dim), jnp.float32)
    weight, bias = init_sae_params(k_p, embed_dim, hidden)

    recon, enc = sae_forward(x, weight, bias)
    jax.block_until_ready((recon, enc))

    # Reference: same math as the PyTorch module, with the kernel's deliberate bf16
    # operand rounding emulated and exact f32 accumulation (precision=HIGHEST).
    x_bf = x.reshape(-1, embed_dim).astype(jnp.bfloat16).astype(jnp.float32)
    w_bf = weight.astype(jnp.bfloat16).astype(jnp.float32)
    pre = lax.dot_general(
        x_bf, w_bf, (((1,), (1,)), ((), ())), precision=lax.Precision.HIGHEST
    ) + bias
    enc_ref = jnp.maximum(pre, 0.0)
    enc_bf = enc_ref.astype(jnp.bfloat16).astype(jnp.float32)
    recon_ref = lax.dot_general(
        enc_bf, w_bf, (((1,), (0,)), ((), ())), precision=lax.Precision.HIGHEST
    )
    recon_ref = recon_ref.reshape(batch, seq, embed_dim)
    enc_ref = enc_ref.reshape(batch, seq, hidden)

    assert recon.shape == (batch, seq, embed_dim)
    assert enc.shape == (batch, seq, hidden)
    assert jnp.allclose(recon, recon_ref, atol=2e-3, rtol=2e-3)
    assert jnp.allclose(enc, enc_ref, atol=2e-3, rtol=2e-3)

    print("KERNEL_OK")
</pallas_src>

<mosaic_0001>
module attributes {stable_mosaic.version = 11 : i64} {
  func.func @_sae_kernel(%arg0: i32, %arg1: i32, %arg2: memref<16x128xbf16, #tpu.memory_space<vmem>>, %arg3: memref<128x128xbf16, #tpu.memory_space<vmem>>, %arg4: memref<1x128xf32, #tpu.memory_space<vmem>>, %arg5: memref<16x128xf32, #tpu.memory_space<vmem>>, %arg6: memref<16x128xf32, #tpu.memory_space<vmem>>) attributes {dimension_semantics = [#tpu.dimension_semantics<parallel>, #tpu.dimension_semantics<arbitrary>], iteration_bounds = array<i64: 1, 1>, scalar_prefetch = 0 : i64, scratch_operands = 0 : i64, tpu.core_type = #tpu.core_type<tc>, window_params = [{transform_indices = @transform_0, window_bounds = array<i64: 16, 128>}, {transform_indices = @transform_1, window_bounds = array<i64: 128, 128>}, {transform_indices = @transform_2, window_bounds = array<i64: 1, 128>}, {transform_indices = @transform_3, window_bounds = array<i64: 16, 128>}, {transform_indices = @transform_4, window_bounds = array<i64: 16, 128>}]} {
    %c0_i32 = arith.constant 0 : i32
    %0 = arith.cmpi eq, %arg1, %c0_i32 : i32
    %1 = arith.extui %0 : i1 to i32
    %c0_i32_0 = arith.constant 0 : i32
    %2 = arith.cmpi ne, %1, %c0_i32_0 : i32
    scf.if %2 {
      %cst_14 = arith.constant 0.000000e+00 : f32
      %17 = vector.broadcast %cst_14 : f32 to vector<16x128xf32>
      %c0_15 = arith.constant 0 : index
      %c0_16 = arith.constant 0 : index
      %18 = vector.load %arg5[%c0_15, %c0_16] : memref<16x128xf32, #tpu.memory_space<vmem>>, vector<16x128xf32>
      tpu.vector_store %arg5[%c0_15, %c0_16], %17 {strides = array<i32>} : memref<16x128xf32, #tpu.memory_space<vmem>>, vector<16x128xf32>,
    } else {
    }
    %c0 = arith.constant 0 : index
    %c0_1 = arith.constant 0 : index
    %3 = vector.load %arg2[%c0, %c0_1] : memref<16x128xbf16, #tpu.memory_space<vmem>>, vector<16x128xbf16>
    %c0_2 = arith.constant 0 : index
    %c0_3 = arith.constant 0 : index
    %4 = vector.load %arg3[%c0_2, %c0_3] : memref<128x128xbf16, #tpu.memory_space<vmem>>, vector<128x128xbf16>
    %cst = arith.constant dense<0.000000e+00> : vector<16x128xf32>
    %5 = tpu.matmul %3, %4, %cst {dimension_numbers = #tpu.dot_dimension_numbers<[1], [1], [0], [0], [0, 0, 1, 0], [], []>} : vector<16x128xbf16>, vector<128x128xbf16>, vector<16x128xf32> -> vector<16x128xf32>
    %c0_4 = arith.constant 0 : index
    %c0_5 = arith.constant 0 : index
    %6 = vector.load %arg4[%c0_4, %c0_5] : memref<1x128xf32, #tpu.memory_space<vmem>>, vector<1x128xf32>
    %7 = vector.broadcast %6 : vector<1x128xf32> to vector<16x128xf32>
    %8 = arith.addf %5, %7 : vector<16x128xf32>
    %cst_6 = arith.constant 0.000000e+00 : f32
    %9 = vector.broadcast %cst_6 : f32 to vector<16x128xf32>
    %10 = arith.maximumf %8, %9 : vector<16x128xf32>
    %c0_7 = arith.constant 0 : index
    %c0_8 = arith.constant 0 : index
    %11 = vector.load %arg6[%c0_7, %c0_8] : memref<16x128xf32, #tpu.memory_space<vmem>>, vector<16x128xf32>
    tpu.vector_store %arg6[%c0_7, %c0_8], %10 {strides = array<i32>} : memref<16x128xf32, #tpu.memory_space<vmem>>, vector<16x128xf32>,
    %c0_9 = arith.constant 0 : index
    %c0_10 = arith.constant 0 : index
    %12 = vector.load %arg5[%c0_9, %c0_10] : memref<16x128xf32, #tpu.memory_space<vmem>>, vector<16x128xf32>
    %13 = arith.truncf %10 : vector<16x128xf32> to vector<16x128xbf16>
    %cst_11 = arith.constant dense<0.000000e+00> : vector<16x128xf32>
    %14 = tpu.matmul %13, %4, %cst_11 {dimension_numbers = #tpu.dot_dimension_numbers<[1], [0], [0], [1], [0, 0, 1, 1], [], []>} : vector<16x128xbf16>, vector<128x128xbf16>, vector<16x128xf32> -> vector<16x128xf32>
    %15 = arith.addf %12, %14 : vector<16x128xf32>
    %c0_12 = arith.constant 0 : index
    %c0_13 = arith.constant 0 : index
    %16 = vector.load %arg5[%c0_12, %c0_13] : memref<16x128xf32, #tpu.memory_space<vmem>>, vector<16x128xf32>
    tpu.vector_store %arg5[%c0_12, %c0_13], %15 {strides = array<i32>} : memref<16x128xf32, #tpu.memory_space<vmem>>, vector<16x128xf32>,
    return
  }
  func.func @transform_0(%arg0: i32, %arg1: i32) -> (i32, i32) {
    %c0_i32 = arith.constant 0 : i32
    %c0_i32_0 = arith.constant 0 : i32
    return %arg0, %c0_i32 : i32, i32
  }
  func.func @transform_1(%arg0: i32, %arg1: i32) -> (i32, i32) {
    %c0_i32 = arith.constant 0 : i32
    %c0_i32_0 = arith.constant 0 : i32
    return %arg1, %c0_i32 : i32, i32
  }
  func.func @transform_2(%arg0: i32, %arg1: i32) -> (i32, i32) {
    %c0_i32 = arith.constant 0 : i32
    %c0_i32_0 = arith.constant 0 : i32
    return %c0_i32, %arg1 : i32, i32
  }
  func.func @transform_3(%arg0: i32, %arg1: i32) -> (i32, i32) {
    %c0_i32 = arith.constant 0 : i32
    %c0_i32_0 = arith.constant 0 : i32
    return %arg0, %c0_i32 : i32, i32
  }
  func.func @transform_4(%arg0: i32, %arg1: i32) -> (i32, i32) {
    %c0_i32 = arith.constant 0 : i32
    return %arg0, %arg1 : i32, i32
  }
}

</mosaic_0001>

<bundles_post_ra>
// kernel: tpu_custom_call.1
= control target key start
LH: loop header
LB: loop body
LE: loop exit
PB: predicated region body
PF: predicated region fallthrough
CT: control target
= control target key end

     0   :  { %10 = vsyncpa [#allocation3], 0  ;;  %s528_s0 = inlined_call_operand.hbm [shape: bf16[16,128], index: 0, kind: input, shape index: {}]   ;;  %s529_s1 = inlined_call_operand.hbm [shape: bf16[128,128], index: 1, kind: input, shape index: {}]   ;;  %s530_s2 = inlined_call_operand.vmem [shape: f32[1,128], index: 2, kind: input, shape index: {}]   ;;  %s531_s3 = inlined_call_operand.hbm [shape: f32[16,128], index: 3, kind: output, shape index: {0}]   ;;  %s532_s4 = inlined_call_operand.hbm [shape: f32[16,128], index: 4, kind: output, shape index: {1}]  }
   0x1   :  { %11 = vsyncpa [#allocation6], 0 }
   0x2   :  { %12 = vsyncpa [#allocation4], 0 }
   0x3   :  { %13 = vsyncpa [#allocation9], 0  ;;  %s442_s15 = smov [#allocation2]   ;;  %s346_s19 = scalar_lea.hbm %s528_s0, 128 }
   0x4   :  { %s19_s16 = sshll.u32 %s442_s15, 4  ;;  %p347_p0 = scmp.ne.s32.totalorder %s528_s0, %s346_s19  ;;  %s20_s16 = int_to_ptr.vmem [resolvable:$true] %s19_s16 }
   0x5   :  { %p350_p1 = scmp.lt.u32.totalorder %s346_s19, %s528_s0 }
   0x7   :  { %p352_p2 = pnand %p350_p1, %p347_p0 }
   0x9   :  { %355 = shalt.err (!%p352_p2)
}
   0xa   :  { %s356_s24 = scalar_lea.vmem %s20_s16, 128  ;;  %p361_p4 = scmp.lt.s32.totalorder %s20_s16, %s20_s16 }
   0xb   :  { %p357_p3 = scmp.ne.s32.totalorder %s20_s16, %s356_s24  ;;  %p362_p5 = scmp.lt.s32.totalorder %s356_s24, %s356_s24 }
   0xd   :  { %p363_p6 = por %p362_p5, %p361_p4 }
   0xf   :  { %p364_p7 = pnand %p363_p6, %p357_p3 }
  0x11   :  { %367 = shalt.err (!%p364_p7)
}
  0x12   :  { %s443_s25 = smov 64   ;;  %s444_s26 = smov 4  }
  0x13   :  { %25 = dma.hbm_to_vmem [thread:$0]  %s528_s0, 128, %s20_s16, [#allocation3], %s443_s25, %s443_s25, %s444_s26  }
  0x14   :  { %s445_s29 = smov [#allocation5]   ;;  %s368_s7 = scalar_lea.hbm %s529_s1, 1024 }
  0x15   :  { %s31_s30 = sshll.u32 %s445_s29, 4  ;;  %p369_p8 = scmp.ne.s32.totalorder %s529_s1, %s368_s7  ;;  %s32_s30 = int_to_ptr.vmem [resolvable:$true] %s31_s30 }
  0x16   :  { %p372_p9 = scmp.lt.u32.totalorder %s368_s7, %s529_s1 }
  0x18   :  { %p374_p10 = pnand %p372_p9, %p369_p8 }
  0x1a   :  { %377 = shalt.err (!%p374_p10)
}
  0x1b   :  { %s378_s12 = scalar_lea.vmem %s32_s30, 1024  ;;  %p383_p12 = scmp.lt.s32.totalorder %s32_s30, %s32_s30 }
  0x1c   :  { %p379_p11 = scmp.ne.s32.totalorder %s32_s30, %s378_s12  ;;  %p384_p13 = scmp.lt.s32.totalorder %s378_s12, %s378_s12 }
  0x1e   :  { %p385_p0 = por %p384_p13, %p383_p12 }
  0x20   :  { %p386_p1 = pnand %p385_p0, %p379_p11 }
  0x22   :  { %389 = shalt.err (!%p386_p1)
}
  0x23   :  { %37 = dma.hbm_to_vmem [thread:$0]  %s529_s1, 1024, %s32_s30, [#allocation6], %s443_s25, %s443_s25, %s444_s26  }
  0x24   :  { %434 = dma.done.wait [#allocation3], 128  }
  0x25   :  { %435 = vsyncadd [#allocation3], 4294967168 }
  0x26   :  { %436 = dma.done.wait [#allocation6], 1024  }
  0x27   :  { %437 = vsyncadd [#allocation6], 4294966272  ;;  %v446_v0 = vmov 0.0   ;;  %vm447_vm0 = vmmov 0   ;;  %v337_v1 = vld [vmem:[#allocation5] sm:$0xff]   ;;  %v338_v2 = vld [vmem:[#allocation5 + $0x8] sm:$0xff]  }
  0x28   :  { %287 = vmatprep.subr.bf16.mxu0 %v446_v0  ;;  %303 = vmatprep.mubr.msk.bf16.mxu0 %vm447_vm0, %v446_v0  ;;  %v339_v3 = vld [vmem:[#allocation5 + $0x10] sm:$0xff]   ;;  %v340_v4 = vld [vmem:[#allocation5 + $0x18] sm:$0xff]   ;;  %v341_v5 = vld [vmem:[#allocation5 + $0x20] sm:$0xff]   ;;  %s448_s15 = smov [#allocation8]  }
  0x29   :  { %307 = vmatprep.subr.bf16.mxu1 %v446_v0  ;;  %323 = vmatprep.mubr.msk.bf16.mxu1 %vm447_vm0, %v446_v0  ;;  %v342_v6 = vld [vmem:[#allocation5 + $0x28] sm:$0xff]   ;;  %v343_v7 = vld [vmem:[#allocation5 + $0x30] sm:$0xff]   ;;  %v344_v8 = vld [vmem:[#allocation5 + $0x38] sm:$0xff]   ;;  %s242_s16 = sshll.u32 %s448_s15, 4  ;;  %s243_s16 = int_to_ptr.vmem [resolvable:$true] %s242_s16 }
  0x2a   :  { %288 = vmatpush3.bf16.xpose.msra.mxu0 %v337_v1  ;;  %308 = vmatpush3.bf16.msra.mxu1 %v337_v1  ;;  %v345_v9 = vld [vmem:[#allocation2] sm:$0xff]   ;;  %s390_s17 = scalar_lea.vmem %s243_s16, 256  ;;  %p395_p3 = scmp.lt.s32.totalorder %s243_s16, %s243_s16 }
  0x2b   :  { %289 = vmatprep.subr.bf16.mxu0 %v446_v0  ;;  %309 = vmatprep.subr.bf16.mxu1 %v446_v0  ;;  %v259_v10 = vld [vmem:[%s530_s2] ss:$0 sm:$0xff]  ;;  %p391_p2 = scmp.ne.s32.totalorder %s243_s16, %s390_s17  ;;  %p396_p4 = scmp.lt.s32.totalorder %s390_s17, %s390_s17 }
  0x2d   :  { %p397_p5 = por %p396_p4, %p395_p3 }
  0x2e   :  { %310 = vmatpush3.bf16.msra.mxu1 %v338_v2 }
  0x2f   :  { %311 = vmatprep.subr.bf16.mxu1 %v446_v0  ;;  %p398_p6 = pnand %p397_p5, %p391_p2 }
  0x32   :  { %290 = vmatpush3.bf16.xpose.msra.mxu0 %v338_v2  ;;  %312 = vmatpush3.bf16.msra.mxu1 %v339_v3 }
  0x33   :  { %291 = vmatprep.subr.bf16.mxu0 %v446_v0  ;;  %313 = vmatprep.subr.bf16.mxu1 %v446_v0 }
  0x36   :  { %314 = vmatpush3.bf16.msra.mxu1 %v340_v4 }
  0x37   :  { %315 = vmatprep.subr.bf16.mxu1 %v446_v0 }
  0x3a   :  { %292 = vmatpush3.bf16.xpose.msra.mxu0 %v339_v3  ;;  %316 = vmatpush3.bf16.msra.mxu1 %v341_v5 }
  0x3b   :  { %293 = vmatprep.subr.bf16.mxu0 %v446_v0  ;;  %317 = vmatprep.subr.bf16.mxu1 %v446_v0 }
  0x3e   :  { %318 = vmatpush3.bf16.msra.mxu1 %v342_v6 }
  0x3f   :  { %319 = vmatprep.subr.bf16.mxu1 %v446_v0 }
  0x42   :  { %294 = vmatpush3.bf16.xpose.msra.mxu0 %v340_v4  ;;  %320 = vmatpush3.bf16.msra.mxu1 %v343_v7 }
  0x43   :  { %295 = vmatprep.subr.bf16.mxu0 %v446_v0  ;;  %321 = vmatprep.subr.bf16.mxu1 %v446_v0 }
  0x46   :  { %322 = vmatpush3.bf16.msra.mxu1 %v344_v8 }
  0x4a   :  { %296 = vmatpush3.bf16.xpose.msra.mxu0 %v341_v5 }
  0x4b   :  { %297 = vmatprep.subr.bf16.mxu0 %v446_v0 }
  0x52   :  { %298 = vmatpush3.bf16.xpose.msra.mxu0 %v342_v6 }
  0x53   :  { %299 = vmatprep.subr.bf16.mxu0 %v446_v0 }
  0x5a   :  { %300 = vmatpush3.bf16.xpose.msra.mxu0 %v343_v7 }
  0x5b   :  { %301 = vmatprep.subr.bf16.mxu0 %v446_v0 }
  0x62   :  { %302 = vmatpush3.bf16.xpose.msra.mxu0 %v344_v8 }
  0x69   :  { %304 = vmatmul.mubr.bf16.vlgmr.msra.gmra.mrb[0].mxu0 %v345_v9 }
 0x13c   :  { %v166_v11 = vpop.f32.mrb[0].mxu0 }
 0x13d   :  { %v167_v12 = vadd.f32 %v259_v10, %v166_v11  ;;  %v305_v13 = vpop.f32.mrb[1].mxu0 }
 0x13e   :  { %v169_v14 = vpop.f32.mrb[2].mxu0 }
 0x13f   :  { %v173_v15 = vmax.f32 %v167_v12, 0.0  ;;  %v170_v16 = vadd.f32 %v259_v10, %v169_v14  ;;  %v306_v17 = vpop.f32.mrb[3].mxu0 }
 0x141   :  { %175 = vst [vmem:[#allocation8] sm:$0xff] %v173_v15  ;;  %v174_v18 = vmax.f32 %v170_v16, 0.0 }
 0x143   :  { %176 = vst [vmem:[#allocation8 + $0x8] sm:$0xff] %v174_v18  ;;  %v179_v19 = vpack.c.bf16 %v174_v18, %v173_v15 }
 0x145   :  { %324 = vmatmul.mubr.bf16.vlgmr.msra.gmra.mrb[0].mxu1 %v179_v19 }
 0x146   :  { %401 = shalt.err (!%p398_p6)
}
 0x147   :  { %s402_s19 = scalar_lea.hbm %s532_s4, 256 }
 0x148   :  { %p403_p7 = scmp.ne.s32.totalorder %s532_s4, %s402_s19  ;;  %p406_p8 = scmp.lt.u32.totalorder %s402_s19, %s532_s4 }
 0x14a   :  { %p408_p9 = pnand %p406_p8, %p403_p7 }
 0x14c   :  { %411 = shalt.err (!%p408_p9)
}
 0x14d   :  { %s449_s24 = smov 128   ;;  %s450_s25 = smov 8  }
 0x14e   :  { %248 = dma.vmem_to_hbm [thread:$0]  %s243_s16, 256, %s532_s4, [#allocation9], %s449_s24, %s449_s24, %s450_s25  }
 0x14f   :  { %s451_s28 = smov [#allocation7]  }
 0x150   :  { %s230_s29 = sshll.u32 %s451_s28, 4  ;;  %s231_s29 = int_to_ptr.vmem [resolvable:$true] %s230_s29 }
 0x151   :  { %s412_s30 = scalar_lea.vmem %s231_s29, 256  ;;  %p417_p11 = scmp.lt.s32.totalorder %s231_s29, %s231_s29 }
 0x152   :  { %p413_p10 = scmp.ne.s32.totalorder %s231_s29, %s412_s30  ;;  %p418_p12 = scmp.lt.s32.totalorder %s412_s30, %s412_s30 }
 0x154   :  { %p419_p13 = por %p418_p12, %p417_p11 }
 0x156   :  { %p420_p0 = pnand %p419_p13, %p413_p10 }
 0x218   :  { %v214_v20 = vpop.f32.mrb[0].mxu1 }
 0x219   :  { %v325_v21 = vpop.f32.mrb[1].mxu1  ;;  %223 = vst [vmem:[#allocation7] sm:$0xff] %v214_v20 }
 0x21a   :  { %v217_v22 = vpop.f32.mrb[2].mxu1 }
 0x21b   :  { %v326_v23 = vpop.f32.mrb[3].mxu1  ;;  %224 = vst [vmem:[#allocation7 + $0x8] sm:$0xff] %v217_v22 }
 0x21c   :  { %423 = shalt.err (!%p420_p0)
}
 0x21d   :  { %s424_s4 = scalar_lea.hbm %s531_s3, 256 }
 0x21e   :  { %p425_p1 = scmp.ne.s32.totalorder %s531_s3, %s424_s4  ;;  %p428_p2 = scmp.lt.u32.totalorder %s424_s4, %s531_s3 }
 0x220   :  { %p430_p3 = pnand %p428_p2, %p425_p1 }
 0x222   :  { %433 = shalt.err (!%p430_p3)
}
 0x223   :  { %236 = dma.vmem_to_hbm [thread:$0]  %s231_s29, 256, %s531_s3, [#allocation4], %s449_s24, %s449_s24, %s450_s25  }
 0x224   :  { %438 = dma.done.wait [#allocation4], 256  }
 0x225   :  { %439 = vsyncadd [#allocation4], 4294967040 }
 0x226   :  { %440 = dma.done.wait [#allocation9], 256  }
 0x227   :  { %441 = vsyncadd [#allocation9], 4294967040 }
 0x228   :  { %255 = vsyncpa [#allocation3], 1 }
 0x229   :  { %256 = vsyncpa [#allocation6], 1 }
 0x22a   :  { %257 = vsyncpa [#allocation4], 1 }
 0x22b   :  { %258 = vsyncpa [#allocation9], 1 }

</bundles_post_ra>
